<compile_context>
chip_gen: v5e
topology: v5e:2x2
jax: 0.10.0
libtpu: 0.0.40
codegen_flags: <defaults>
</compile_context>

<pallas_src>
import functools

import jax
import jax.numpy as jnp
from jax.experimental import pallas as pl
from jax.experimental.pallas import tpu as pltpu


# --------------------- pure-XLA path (preferred under fusion) ----------------

def chomp_t_xla(x: jax.Array, chomp_t: int) -> jax.Array:
    """Fusion-friendly reference: XLA can eliminate the copy entirely."""
    return x[:, :, : x.shape[2] - chomp_t, :]


# --------------------- path 1: direct strided HBM->HBM DMA -------------------

def _chomp_t_dma_kernel(t_out, chunk, k, rem, rem_start, x_hbm, o_hbm, sems):
    """Copy x_hbm[rows, :t_out, :] -> o_hbm[rows, :, :] for this step's rows.

    All `k` chunk DMAs of a step are started before any wait (per-slot
    semaphores), keeping the DMA engine busy back-to-back.  The last grid step
    additionally copies the `rem` leftover slices (static size).
    """
    i = pl.program_id(0)
    base = i * (k * chunk)

    copies = []
    for j in range(k):  # static unroll; k is tiny (1..2)
        start = base + j * chunk
        cp = pltpu.make_async_copy(
            x_hbm.at[pl.ds(start, chunk), :t_out, :],
            o_hbm.at[pl.ds(start, chunk), :, :],
            sems.at[j],
        )
        cp.start()
        copies.append(cp)

    if rem > 0:
        @pl.when(i == pl.num_programs(0) - 1)
        def _():
            rc = pltpu.make_async_copy(
                x_hbm.at[pl.ds(rem_start, rem), :t_out, :],
                o_hbm.at[pl.ds(rem_start, rem), :, :],
                sems.at[k],
            )
            rc.start()
            rc.wait()

    for cp in copies:
        cp.wait()


def _dma_chomp(x3: jax.Array, t_out: int) -> jax.Array:
    batch, t, f = x3.shape
    itemsize = jnp.dtype(x3.dtype).itemsize
    out_slice_bytes = t_out * f * itemsize

    # 2 "parallel" grid steps -> balanced 2-TensorCore sharding on v7x.
    outer = 2 if batch >= 2 else 1
    per_step = batch // outer
    # Up to 2 simultaneously-in-flight DMAs per step while each stays large
    # enough to be burst-efficient.
    k = 2 if (per_step >= 2 and (per_step // 2) * out_slice_bytes >= (256 << 10)) else 1
    chunk = batch // (outer * k)          # >= 1 by construction
    rem = batch - outer * k * chunk       # 0 <= rem < outer*k, handled by last step
    rem_start = outer * k * chunk
    n_sems = k + (1 if rem > 0 else 0)

    kernel = functools.partial(_chomp_t_dma_kernel, t_out, chunk, k, rem, rem_start)
    bytes_accessed = 2 * batch * t_out * f * itemsize  # strided read + dense write

    return pl.pallas_call(
        kernel,
        out_shape=jax.ShapeDtypeStruct((batch, t_out, f), x3.dtype),
        grid=(outer,),
        in_specs=[pl.BlockSpec(memory_space=pl.ANY)],
        out_specs=pl.BlockSpec(memory_space=pl.ANY),
        scratch_shapes=[pltpu.SemaphoreType.DMA((n_sems,))],
        compiler_params=pltpu.CompilerParams(
            dimension_semantics=("parallel",),
        ),
        cost_estimate=pl.CostEstimate(
            flops=0, transcendentals=0, bytes_accessed=bytes_accessed),
    )(x3)


# --------------- path 2: lane-dense VMEM-tiled copy (small runs) -------------

def _chomp_t_vmem_kernel(t_out_f, x_ref, o_ref):
    # x_ref: (rows, T*F) block; o_ref: (rows, T_out*F) block.  The kept prefix
    # along T is the contiguous first t_out_f elements of each flattened slice.
    o_ref[...] = x_ref[:, :t_out_f]


def _vmem_chomp(x3: jax.Array, t_out: int) -> jax.Array:
    batch, t, f = x3.shape
    itemsize = jnp.dtype(x3.dtype).itemsize
    t_out_f = t_out * f

    # Free metadata reshape: contiguous (T, F) dims merge -> lane-dense copy.
    x2 = x3.reshape(batch, t * f)

    row_bytes = t * f * itemsize
    max_block_bytes = 4 << 20  # in-block; 2x double-buffered (in+out) << 32 MiB scoped VMEM (v7x-safe)
    if batch * row_bytes <= max_block_bytes:
        rows = batch
    else:
        rows = max(8, (max_block_bytes // row_bytes) // 8 * 8)
        rows = min(rows, batch)
    grid = (pl.cdiv(batch, rows),)

    out2 = pl.pallas_call(
        functools.partial(_chomp_t_vmem_kernel, t_out_f),
        out_shape=jax.ShapeDtypeStruct((batch, t_out_f), x3.dtype),
        grid=grid,
        in_specs=[pl.BlockSpec((rows, t * f), lambda i: (i, 0))],
        out_specs=pl.BlockSpec((rows, t_out_f), lambda i: (i, 0)),
        compiler_params=pltpu.CompilerParams(
            dimension_semantics=("parallel",),
        ),
    )(x2)
    return out2.reshape(batch, t_out, f)


# ----------------------------------- wrapper ---------------------------------

_SMALL_RUN_BYTES = 1024  # below this, strided HBM->HBM bursts are inefficient


@functools.partial(jax.jit, static_argnames=("chomp_t",))
def chomp_t_forward(x: jax.Array, chomp_t: int) -> jax.Array:
    """Pallas implementation of Chomp_T: x[:, :, :-chomp_t, :]."""
    if chomp_t <= 0:
        raise ValueError("chomp_t must be positive")
    n, c, t, f = x.shape
    t_out = t - chomp_t
    if t_out <= 0:
        raise ValueError("chomp_t must be smaller than the time dimension")

    batch = n * c
    x3 = x.reshape(batch, t, f)  # free: contiguous dims merge

    itemsize = jnp.dtype(x.dtype).itemsize
    run_bytes = t_out * f * itemsize  # contiguous run per (n, c) slice
    if run_bytes < _SMALL_RUN_BYTES:
        out3 = _vmem_chomp(x3, t_out)
    else:
        out3 = _dma_chomp(x3, t_out)

    return out3.reshape(n, c, t_out, f)


if __name__ == "__main__":
    key = jax.random.PRNGKey(0)
    chomp = 3

    def _check(shape):
        x = jax.random.normal(key, shape, dtype=jnp.float32)
        out = jax.block_until_ready(chomp_t_forward(x, chomp))
        ref = x[:, :, :-chomp, :]
        assert out.shape == ref.shape, (out.shape, ref.shape)
        assert out.dtype == ref.dtype, (out.dtype, ref.dtype)
        assert jnp.array_equal(out, ref), f"Pallas Chomp_T mismatch for {shape}"

    # Narrow F: exercises the lane-dense VMEM-tiled fallback path.
    _check((2, 4, 16, 16))
    # Wider F: exercises the direct strided HBM->HBM DMA path (2 parallel steps).
    _check((2, 4, 16, 64))
    # Odd flattened batch: exercises the static remainder DMA on the last step.
    _check((3, 1, 16, 64))

    print("KERNEL_OK")
</pallas_src>

<mosaic_0001>
module attributes {stable_mosaic.version = 11 : i64} {
  func.func @_chomp_t_vmem_kernel(%arg0: i32, %arg1: memref<8x256xf32, #tpu.memory_space<vmem>>, %arg2: memref<8x208xf32, #tpu.memory_space<vmem>>) attributes {dimension_semantics = [#tpu.dimension_semantics<parallel>], iteration_bounds = array<i64: 1>, scalar_prefetch = 0 : i64, scratch_operands = 0 : i64, tpu.core_type = #tpu.core_type<tc>, window_params = [{transform_indices = @transform_0, window_bounds = array<i64: 8, 256>}, {transform_indices = @transform_1, window_bounds = array<i64: 8, 208>}]} {
    %c0 = arith.constant 0 : index
    %c0_0 = arith.constant 0 : index
    %0 = vector.load %arg1[%c0, %c0_0] : memref<8x256xf32, #tpu.memory_space<vmem>>, vector<8x208xf32>
    %c0_1 = arith.constant 0 : index
    %c0_2 = arith.constant 0 : index
    %1 = vector.load %arg2[%c0_1, %c0_2] : memref<8x208xf32, #tpu.memory_space<vmem>>, vector<8x208xf32>
    tpu.vector_store %arg2[%c0_1, %c0_2], %0 {strides = array<i32>} : memref<8x208xf32, #tpu.memory_space<vmem>>, vector<8x208xf32>,
    return
  }
  func.func @transform_0(%arg0: i32) -> (i32, i32) {
    %c0_i32 = arith.constant 0 : i32
    %c0_i32_0 = arith.constant 0 : i32
    return %arg0, %c0_i32 : i32, i32
  }
  func.func @transform_1(%arg0: i32) -> (i32, i32) {
    %c0_i32 = arith.constant 0 : i32
    %c0_i32_0 = arith.constant 0 : i32
    return %arg0, %c0_i32 : i32, i32
  }
}

</mosaic_0001>

<bundles_post_ra>
// kernel: chomp_t_forward.1
= control target key start
LH: loop header
LB: loop body
LE: loop exit
PB: predicated region body
PF: predicated region fallthrough
CT: control target
= control target key end

     0   :  { %vm11_vm0 = vcmask 654336   ;;  %s39_s0 = inlined_call_operand.vmem [shape: f32[8,256], index: 0, kind: input, shape index: {}]   ;;  %s40_s1 = inlined_call_operand.vmem [shape: f32[8,208], index: 1, kind: output, shape index: {}]  }
   0x1   :  { %v8_v0 = vld [vmem:[%s39_s0] sm:$0xff]  ;;  %v9_v1 = vld [vmem:[%s39_s0 + $0x8] sm:$0xff] }
   0x2   :  { %10 = vst [vmem:[%s40_s1] sm:$0xff] %v8_v0 }
   0x3   :  { %12 = vst.msk [vmem:[%s40_s1 + $0x8] sm:$0xff] %vm11_vm0, %v9_v1 }

</bundles_post_ra>
